<compile_context>
chip_gen: v5e
topology: v5e:2x2
jax: 0.10.0
libtpu: 0.0.40
codegen_flags: <defaults>
</compile_context>

<pallas_src>
import functools

import jax
import jax.numpy as jnp
from jax.experimental import pallas as pl
from jax.experimental.pallas import tpu as pltpu


def _avgpool_shortcut_kernel(x_ref, p_ref, o_ref, *, imgs_per_block, in_c, out_c):
    # x_ref: (imgs_per_block * in_c, H*W)
    # p_ref: (H*W, H_out*W_out)   pooling matrix (1/(kernel^2) folded in)
    # o_ref: (imgs_per_block * out_c, H_out*W_out)
    x = x_ref[...]
    p = p_ref[...]
    pooled = jnp.dot(x, p, preferred_element_type=jnp.float32).astype(o_ref.dtype)

    pad_c = out_c - in_c
    if pad_c == 0:
        o_ref[...] = pooled
        return

    n_cols = o_ref.shape[1]
    zeros_pad = jnp.zeros((pad_c, n_cols), o_ref.dtype)
    for k in range(imgs_per_block):  # static, fully unrolled (imgs_per_block <= 64)
        o_ref[pl.ds(k * out_c, in_c), :] = pooled[k * in_c:(k + 1) * in_c, :]
        o_ref[pl.ds(k * out_c + in_c, pad_c), :] = zeros_pad


def _pooling_matrix(H, W, H_out, W_out, kernel, stride, weight, dtype):
    """P[h*W + w, i*W_out + j] = weight if (h, w) lies in output window (i, j)."""
    h = jnp.arange(H)[:, None]
    i = jnp.arange(H_out)[None, :]
    a = ((h >= i * stride) & (h < i * stride + kernel)).astype(jnp.float32)  # (H, H_out)
    w = jnp.arange(W)[:, None]
    j = jnp.arange(W_out)[None, :]
    b = ((w >= j * stride) & (w < j * stride + kernel)).astype(jnp.float32)  # (W, W_out)
    p = a[:, None, :, None] * b[None, :, None, :]          # (H, W, H_out, W_out)
    p = p.reshape(H * W, H_out * W_out) * jnp.float32(weight)
    return p.astype(dtype)


def _pick_images_per_block(N, in_c, out_c, bytes_per_image,
                           target_bytes=2 << 20, max_images=64):
    """Largest divisor of N giving 8-aligned row blocks and <= target input bytes."""
    legal = []
    for d in range(1, N + 1):
        if N % d:
            continue
        if d == N or ((d * in_c) % 8 == 0 and (d * out_c) % 8 == 0):
            legal.append(d)
    fitting = [d for d in legal
               if d * bytes_per_image <= target_bytes and d <= max_images]
    return max(fitting) if fitting else min(legal)


def avg_pool_shortcut(x, stride, out_c, in_c):
    N, C, H, W = x.shape
    assert C == in_c, "channel mismatch"
    assert out_c >= in_c
    assert jnp.issubdtype(x.dtype, jnp.floating)

    if H % 2 != 0:
        kernel, weight = 1, 1.0                            # F.avg_pool2d(x, 1, stride)
    else:
        kernel, weight = stride, 1.0 / (stride * stride)   # F.avg_pool2d(x, stride, stride)
    H_out = (H - kernel) // stride + 1
    W_out = (W - kernel) // stride + 1
    hw, howo = H * W, H_out * W_out

    p = _pooling_matrix(H, W, H_out, W_out, kernel, stride, weight, x.dtype)

    itemsize = jnp.dtype(x.dtype).itemsize
    bi = _pick_images_per_block(N, in_c, out_c, in_c * hw * itemsize)
    grid = (N // bi,)

    x2 = x.reshape(N * in_c, hw)   # free view: whole spatial extent on the lane axis
    kfn = functools.partial(_avgpool_shortcut_kernel,
                            imgs_per_block=bi, in_c=in_c, out_c=out_c)
    out2 = pl.pallas_call(
        kfn,
        out_shape=jax.ShapeDtypeStruct((N * out_c, howo), x.dtype),
        grid_spec=pltpu.PrefetchScalarGridSpec(
            num_scalar_prefetch=0,
            grid=grid,
            in_specs=[
                pl.BlockSpec((bi * in_c, hw), lambda i: (i, 0)),
                pl.BlockSpec((hw, howo), lambda i: (0, 0)),   # resident pooling matrix
            ],
            out_specs=pl.BlockSpec((bi * out_c, howo), lambda i: (i, 0)),
        ),
        compiler_params=pltpu.CompilerParams(
            dimension_semantics=("parallel",),
            vmem_limit_bytes=32 * 1024 * 1024,
        ),
    )(x2, p)
    return out2.reshape(N, out_c, H_out, W_out)


def _reference(x, stride, out_c, in_c):
    # Pure-JAX reference matching the F.avg_pool2d semantics used in the module.
    N, C, H, W = x.shape
    if H % 2 != 0:
        pooled = x[:, :, ::stride, ::stride]
    else:
        s = stride
        H_out = (H - s) // s + 1
        W_out = (W - s) // s + 1
        xt = x[:, :, : H_out * s, : W_out * s].reshape(N, C, H_out, s, W_out, s)
        pooled = xt.mean(axis=(3, 5))
    pad = jnp.zeros((N, out_c - in_c, pooled.shape[2], pooled.shape[3]), x.dtype)
    return jnp.concatenate([pooled, pad], axis=1)


if __name__ == "__main__":
    key = jax.random.PRNGKey(0)

    # Even-H branch: F.avg_pool2d(x, stride, stride)
    N, in_c, H, W = 2, 4, 16, 16
    stride, out_c = 2, 8
    x = jax.random.normal(key, (N, in_c, H, W), dtype=jnp.float32)
    out = jax.block_until_ready(avg_pool_shortcut(x, stride, out_c, in_c))
    ref = _reference(x, stride, out_c, in_c)
    assert out.shape == (N, out_c, H // stride, W // stride), out.shape
    assert jnp.allclose(out, ref, atol=1e-5, rtol=1e-5), "even-H mismatch vs reference"

    # Odd-H branch: F.avg_pool2d(x, 1, stride) (pure subsampling)
    x_odd = jax.random.normal(jax.random.PRNGKey(1), (N, in_c, 15, 16),
                              dtype=jnp.float32)
    out_odd = jax.block_until_ready(avg_pool_shortcut(x_odd, stride, out_c, in_c))
    ref_odd = _reference(x_odd, stride, out_c, in_c)
    assert out_odd.shape == ref_odd.shape, out_odd.shape
    assert jnp.allclose(out_odd, ref_odd, atol=1e-5, rtol=1e-5), "odd-H mismatch vs reference"

    print("KERNEL_OK")
</pallas_src>

<mosaic_0001>
module attributes {stable_mosaic.version = 11 : i64} {
  func.func @_avgpool_shortcut_kernel(%arg0: i32, %arg1: memref<8x256xf32, #tpu.memory_space<vmem>>, %arg2: memref<256x64xf32, #tpu.memory_space<vmem>>, %arg3: memref<16x64xf32, #tpu.memory_space<vmem>>) attributes {dimension_semantics = [#tpu.dimension_semantics<parallel>], iteration_bounds = array<i64: 1>, scalar_prefetch = 0 : i64, scratch_operands = 0 : i64, tpu.core_type = #tpu.core_type<tc>, window_params = [{transform_indices = @transform_0, window_bounds = array<i64: 8, 256>}, {pipeline_mode = #tpu.pipeline_mode<synchronous>, transform_indices = @transform_1, window_bounds = array<i64: 256, 64>}, {transform_indices = @transform_2, window_bounds = array<i64: 16, 64>}]} {
    %c0 = arith.constant 0 : index
    %c0_0 = arith.constant 0 : index
    %0 = vector.load %arg1[%c0, %c0_0] : memref<8x256xf32, #tpu.memory_space<vmem>>, vector<8x256xf32>
    %c0_1 = arith.constant 0 : index
    %c0_2 = arith.constant 0 : index
    %1 = vector.load %arg2[%c0_1, %c0_2] : memref<256x64xf32, #tpu.memory_space<vmem>>, vector<256x64xf32>
    %cst = arith.constant dense<0.000000e+00> : vector<8x64xf32>
    %2 = tpu.matmul %0, %1, %cst {dimension_numbers = #tpu.dot_dimension_numbers<[1], [0], [0], [1], [0, 0, 1, 1], [], []>} : vector<8x256xf32>, vector<256x64xf32>, vector<8x64xf32> -> vector<8x64xf32>
    %cst_3 = arith.constant 0.000000e+00 : f32
    %3 = vector.broadcast %cst_3 : f32 to vector<4x64xf32>
    %4 = vector.extract_strided_slice %2 {offsets = [0, 0], sizes = [4, 64], strides = [1, 1]} : vector<8x64xf32> to vector<4x64xf32>
    %c0_4 = arith.constant 0 : index
    %c0_5 = arith.constant 0 : index
    %5 = vector.load %arg3[%c0_4, %c0_5] : memref<16x64xf32, #tpu.memory_space<vmem>>, vector<4x64xf32>
    tpu.vector_store %arg3[%c0_4, %c0_5], %4 {strides = array<i32>} : memref<16x64xf32, #tpu.memory_space<vmem>>, vector<4x64xf32>,
    %c4 = arith.constant 4 : index
    %c0_6 = arith.constant 0 : index
    %6 = vector.load %arg3[%c4, %c0_6] : memref<16x64xf32, #tpu.memory_space<vmem>>, vector<4x64xf32>
    tpu.vector_store %arg3[%c4, %c0_6], %3 {strides = array<i32>} : memref<16x64xf32, #tpu.memory_space<vmem>>, vector<4x64xf32>,
    %7 = vector.extract_strided_slice %2 {offsets = [4, 0], sizes = [4, 64], strides = [1, 1]} : vector<8x64xf32> to vector<4x64xf32>
    %c8 = arith.constant 8 : index
    %c0_7 = arith.constant 0 : index
    %8 = vector.load %arg3[%c8, %c0_7] : memref<16x64xf32, #tpu.memory_space<vmem>>, vector<4x64xf32>
    tpu.vector_store %arg3[%c8, %c0_7], %7 {strides = array<i32>} : memref<16x64xf32, #tpu.memory_space<vmem>>, vector<4x64xf32>,
    %c12 = arith.constant 12 : index
    %c0_8 = arith.constant 0 : index
    %9 = vector.load %arg3[%c12, %c0_8] : memref<16x64xf32, #tpu.memory_space<vmem>>, vector<4x64xf32>
    tpu.vector_store %arg3[%c12, %c0_8], %3 {strides = array<i32>} : memref<16x64xf32, #tpu.memory_space<vmem>>, vector<4x64xf32>,
    return
  }
  func.func @transform_0(%arg0: i32) -> (i32, i32) {
    %c0_i32 = arith.constant 0 : i32
    %c0_i32_0 = arith.constant 0 : i32
    return %arg0, %c0_i32 : i32, i32
  }
  func.func @transform_1(%arg0: i32) -> (i32, i32) {
    %c0_i32 = arith.constant 0 : i32
    %c0_i32_0 = arith.constant 0 : i32
    %c0_i32_1 = arith.constant 0 : i32
    return %c0_i32, %c0_i32_0 : i32, i32
  }
  func.func @transform_2(%arg0: i32) -> (i32, i32) {
    %c0_i32 = arith.constant 0 : i32
    %c0_i32_0 = arith.constant 0 : i32
    return %arg0, %c0_i32 : i32, i32
  }
}

</mosaic_0001>

<bundles_post_ra>
// kernel: tpu_custom_call.1
= control target key start
LH: loop header
LB: loop body
LE: loop exit
PB: predicated region body
PF: predicated region fallthrough
CT: control target
= control target key end

     0   :  { %s264_s0 = inlined_call_operand.vmem [shape: f32[8,256], index: 0, kind: input, shape index: {}]   ;;  %s265_s1 = inlined_call_operand.vmem [shape: f32[256,64], index: 1, kind: input, shape index: {}]   ;;  %s266_s2 = inlined_call_operand.hbm [shape: f32[16,64], index: 2, kind: output, shape index: {}]  }
   0x1   :  { %v29_v0 = vld [vmem:[%s265_s1 + $0x78] sm:$0xff]  ;;  %v28_v2 = vld [vmem:[%s265_s1 + $0x70] sm:$0xff]  ;;  %v27_v4 = vld [vmem:[%s265_s1 + $0x68] sm:$0xff] }
   0x2   :  { %v45_v1 = vld [vmem:[%s265_s1 + $0xf8] sm:$0xff]  ;;  %46 = vmatpush.msra.mxu0 %v29_v0  ;;  %v44_v3 = vld [vmem:[%s265_s1 + $0xf0] sm:$0xff]  ;;  %v43_v5 = vld [vmem:[%s265_s1 + $0xe8] sm:$0xff] }
   0x3   :  { %66 = vmatpush.msra.mxu1 %v45_v1  ;;  %v26_v6 = vld [vmem:[%s265_s1 + $0x60] sm:$0xff]  ;;  %v25_v8 = vld [vmem:[%s265_s1 + $0x58] sm:$0xff]  ;;  %v24_v10 = vld [vmem:[%s265_s1 + $0x50] sm:$0xff] }
   0x4   :  { %47 = vmatpush.msra.mxu0 %v28_v2  ;;  %v42_v7 = vld [vmem:[%s265_s1 + $0xe0] sm:$0xff]  ;;  %v41_v9 = vld [vmem:[%s265_s1 + $0xd8] sm:$0xff]  ;;  %v40_v11 = vld [vmem:[%s265_s1 + $0xd0] sm:$0xff] }
   0x5   :  { %67 = vmatpush.msra.mxu1 %v44_v3  ;;  %v23_v12 = vld [vmem:[%s265_s1 + $0x48] sm:$0xff] }
   0x6   :  { %48 = vmatpush.msra.mxu0 %v27_v4  ;;  %v39_v13 = vld [vmem:[%s265_s1 + $0xc8] sm:$0xff] }
   0x7   :  { %68 = vmatpush.msra.mxu1 %v43_v5 }
   0x8   :  { %49 = vmatpush.msra.mxu0 %v26_v6 }
   0x9   :  { %69 = vmatpush.msra.mxu1 %v42_v7 }
   0xa   :  { %50 = vmatpush.msra.mxu0 %v25_v8 }
   0xb   :  { %70 = vmatpush.msra.mxu1 %v41_v9 }
   0xc   :  { %51 = vmatpush.msra.mxu0 %v24_v10 }
   0xd   :  { %71 = vmatpush.msra.mxu1 %v40_v11 }
   0xe   :  { %7 = vsyncpa [#allocation3], 0  ;;  %v22_v14 = vld [vmem:[%s265_s1 + $0x40] sm:$0xff]  ;;  %52 = vmatpush.msra.mxu0 %v23_v12  ;;  %v21_v16 = vld [vmem:[%s265_s1 + $0x38] sm:$0xff]  ;;  %vm86_vm0 = vcmask 519168   ;;  %v140_v34 = vmov 0.0  }
   0xf   :  { %v38_v15 = vld [vmem:[%s265_s1 + $0xc0] sm:$0xff]  ;;  %72 = vmatpush.msra.mxu1 %v39_v13  ;;  %v37_v17 = vld [vmem:[%s265_s1 + $0xb8] sm:$0xff]  ;;  %v20_v18 = vld [vmem:[%s265_s1 + $0x30] sm:$0xff]  ;;  %88 = vst.msk [vmem:[#allocation2 + $0x4] sm:$0xf] %vm86_vm0, %v140_v34  ;;  %s141_s21 = smov [#allocation2]  }
  0x10   :  { %53 = vmatpush.msra.mxu0 %v22_v14  ;;  %v36_v19 = vld [vmem:[%s265_s1 + $0xb0] sm:$0xff]  ;;  %v19_v20 = vld [vmem:[%s265_s1 + $0x28] sm:$0xff]  ;;  %v18_v22 = vld [vmem:[%s265_s1 + $0x20] sm:$0xff]  ;;  %91 = vst.msk [vmem:[#allocation2 + $0xc] sm:$0xf] %vm86_vm0, %v140_v34  ;;  %s98_s24 = sshll.u32 %s266_s2, 4  ;;  %s99_s24 = int_to_ptr.hbm [resolvable:$true] %s98_s24 }
  0x11   :  { %73 = vmatpush.msra.mxu1 %v38_v15  ;;  %v35_v21 = vld [vmem:[%s265_s1 + $0xa8] sm:$0xff]  ;;  %v34_v23 = vld [vmem:[%s265_s1 + $0xa0] sm:$0xff]  ;;  %v17_v24 = vld [vmem:[%s265_s1 + $0x18] sm:$0xff]  ;;  %vm89_vm1 = vcmask 523268   ;;  %s143_s25 = smov 8  }
  0x12   :  { %54 = vmatpush.msra.mxu0 %v21_v16  ;;  %v33_v25 = vld [vmem:[%s265_s1 + $0x98] sm:$0xff]  ;;  %v16_v26 = vld [vmem:[%s265_s1 + $0x10] sm:$0xff]  ;;  %v15_v28 = vld [vmem:[%s265_s1 + $0x8] sm:$0xff] }
  0x13   :  { %74 = vmatpush.msra.mxu1 %v37_v17  ;;  %v32_v27 = vld [vmem:[%s265_s1 + $0x90] sm:$0xff]  ;;  %v31_v29 = vld [vmem:[%s265_s1 + $0x88] sm:$0xff]  ;;  %v14_v30 = vld [vmem:[%s265_s1] sm:$0xff] }
  0x14   :  { %55 = vmatpush.msra.mxu0 %v20_v18  ;;  %v30_v31 = vld [vmem:[%s265_s1 + $0x80] sm:$0xff]  ;;  %v13_v33 = vld [vmem:[%s264_s0 + $0x8] sm:$0xff]  ;;  %s96_s1 = sshll.u32 %s141_s21, 4  ;;  %s97_s1 = int_to_ptr.vmem [resolvable:$true] %s96_s1 }
  0x15   :  { %75 = vmatpush.msra.mxu1 %v36_v19  ;;  %v12_v32 = vld [vmem:[%s264_s0] sm:$0xff]  ;;  %s142_s0 = smov 128  }
  0x16   :  { %56 = vmatpush.msra.mxu0 %v19_v20 }
  0x17   :  { %76 = vmatpush.msra.mxu1 %v35_v21 }
  0x18   :  { %57 = vmatpush.msra.mxu0 %v18_v22 }
  0x19   :  { %77 = vmatpush.msra.mxu1 %v34_v23 }
  0x1a   :  { %58 = vmatpush.msra.mxu0 %v17_v24 }
  0x1b   :  { %78 = vmatpush.msra.mxu1 %v33_v25 }
  0x1c   :  { %59 = vmatpush.msra.mxu0 %v16_v26 }
  0x1d   :  { %79 = vmatpush.msra.mxu1 %v32_v27 }
  0x1e   :  { %60 = vmatpush.msra.mxu0 %v15_v28 }
  0x1f   :  { %80 = vmatpush.msra.mxu1 %v31_v29 }
  0x20   :  { %61 = vmatpush.msra.mxu0 %v14_v30 }
  0x21   :  { %81 = vmatpush.msra.mxu1 %v30_v31  ;;  %62 = vmatmul.f32.vlgmr.msra.gmra.mxu0 %v12_v32 }
  0x22   :  { %82 = vmatmul.f32.vlgmr.msra.gmra.mxu1 %v13_v33 }
  0x9e   :  { %v63_v35 = vpop.f32.mrf.mxu0 }
  0x9f   :  { %v83_v36 = vpop.f32.mrf.mxu1 }
  0xa0   :  { %v84_v37 = vadd.f32 %v83_v36, %v63_v35 }
  0xa2   :  { %87 = vst.msk [vmem:[#allocation2] sm:$0xf] %vm86_vm0, %v84_v37 }
  0xa3   :  { %90 = vst.msk [vmem:[#allocation2 + $0x4] sm:$0xf0] %vm89_vm1, %v84_v37 }
  0xa4   :  { %104 = dma.vmem_to_hbm [thread:$0]  %s97_s1, 256, %s99_s24, [#allocation3], %s142_s0, %s142_s0, %s143_s25  }
  0xa5   :  { %138 = dma.done.wait [#allocation3], 256  }
  0xa6   :  { %139 = vsyncadd [#allocation3], 4294967040 }
  0xa7   :  { %109 = vsyncpa [#allocation3], 1 }

</bundles_post_ra>
